<compile_context>
chip_gen: v6e
topology: v6e:2x2x1
jax: 0.10.0
libtpu: 0.0.40
codegen_flags: <defaults>
</compile_context>

<pallas_src>
import jax
import jax.numpy as jnp
from jax.experimental import pallas as pl
from jax.experimental.pallas import tpu as pltpu


def _scale_mul_kernel(x_ref, s_ref, o_ref):
    # x_ref: (1, Cb, HW), s_ref: (1, Cb, 1), o_ref: (1, Cb, HW)
    # (1, Cb, 1) broadcasts across the lane (HW) axis — cheap VPU multiply.
    o_ref[...] = x_ref[...] * s_ref[...]


def channel_scale_mul(x650, x645):
    """Computes x650 * x645 with PyTorch broadcasting semantics.

    x650: (N, C, 1, 1), x645: (N, C, H, W)  ->  (N, C, H, W)
    """
    n, c, h, w = x645.shape
    assert x650.shape == (n, c, 1, 1)
    hw = h * w

    # Free views of the native NCHW memory layout (no transpose, no copy).
    x_v = x645.reshape(n, c, hw)   # (N, C, HW): channels on sublanes, HW on lanes
    s_v = x650.reshape(n, c, 1)    # (N, C, 1):  per-channel scalar

    # Split channels into 2 blocks when the halves stay sublane-aligned
    # (so v7x can shard the grid across its two TensorCores); otherwise use
    # one full-channel block.
    if c % 16 == 0:
        num_cb = 2
    else:
        num_cb = 1
    cb = c // num_cb

    out_v = pl.pallas_call(
        _scale_mul_kernel,
        out_shape=jax.ShapeDtypeStruct((n, c, hw), x645.dtype),
        grid=(n, num_cb),
        in_specs=[
            pl.BlockSpec((1, cb, hw), lambda b, j: (b, j, 0)),
            pl.BlockSpec((1, cb, 1), lambda b, j: (b, j, 0)),
        ],
        out_specs=pl.BlockSpec((1, cb, hw), lambda b, j: (b, j, 0)),
        compiler_params=pltpu.CompilerParams(
            dimension_semantics=("parallel", "parallel")
        ),
    )(x_v, s_v)

    # Free view back to NCHW.
    return out_v.reshape(n, c, h, w)


if __name__ == "__main__":
    key = jax.random.PRNGKey(0)
    k1, k2 = jax.random.split(key)

    # Shapes taken directly from the module (already small: ~450 KB).
    x645 = jax.random.normal(k1, (1, 2304, 7, 7), dtype=jnp.float32)
    x650 = jax.random.normal(k2, (1, 2304, 1, 1), dtype=jnp.float32)

    out = channel_scale_mul(x650, x645)
    jax.block_until_ready(out)

    # Correctness check against plain JAX broadcasting (reference semantics).
    ref = x650 * x645
    assert out.shape == (1, 2304, 7, 7)
    assert jnp.allclose(out, ref), "mismatch vs reference"

    print("KERNEL_OK")
</pallas_src>

<mosaic_0001>
module attributes {stable_mosaic.version = 11 : i64} {
  func.func @_scale_mul_kernel(%arg0: i32, %arg1: i32, %arg2: memref<1x1152x49xf32, #tpu.memory_space<vmem>>, %arg3: memref<1x1152x1xf32, #tpu.memory_space<vmem>>, %arg4: memref<1x1152x49xf32, #tpu.memory_space<vmem>>) attributes {dimension_semantics = [#tpu.dimension_semantics<parallel>, #tpu.dimension_semantics<parallel>], iteration_bounds = array<i64: 1, 2>, scalar_prefetch = 0 : i64, scratch_operands = 0 : i64, tpu.core_type = #tpu.core_type<tc>, window_params = [{transform_indices = @transform_0, window_bounds = array<i64: 1, 1152, 49>}, {transform_indices = @transform_1, window_bounds = array<i64: 1, 1152, 1>}, {transform_indices = @transform_2, window_bounds = array<i64: 1, 1152, 49>}]} {
    %c0 = arith.constant 0 : index
    %c0_0 = arith.constant 0 : index
    %c0_1 = arith.constant 0 : index
    %0 = vector.load %arg2[%c0, %c0_0, %c0_1] : memref<1x1152x49xf32, #tpu.memory_space<vmem>>, vector<1x1152x49xf32>
    %c0_2 = arith.constant 0 : index
    %c0_3 = arith.constant 0 : index
    %c0_4 = arith.constant 0 : index
    %1 = vector.load %arg3[%c0_2, %c0_3, %c0_4] : memref<1x1152x1xf32, #tpu.memory_space<vmem>>, vector<1x1152x1xf32>
    %2 = vector.broadcast %1 : vector<1x1152x1xf32> to vector<1x1152x49xf32>
    %3 = arith.mulf %0, %2 : vector<1x1152x49xf32>
    %c0_5 = arith.constant 0 : index
    %c0_6 = arith.constant 0 : index
    %c0_7 = arith.constant 0 : index
    %4 = vector.load %arg4[%c0_5, %c0_6, %c0_7] : memref<1x1152x49xf32, #tpu.memory_space<vmem>>, vector<1x1152x49xf32>
    tpu.vector_store %arg4[%c0_5, %c0_6, %c0_7], %3 {strides = array<i32>} : memref<1x1152x49xf32, #tpu.memory_space<vmem>>, vector<1x1152x49xf32>,
    return
  }
  func.func @transform_0(%arg0: i32, %arg1: i32) -> (i32, i32, i32) {
    %c0_i32 = arith.constant 0 : i32
    %c0_i32_0 = arith.constant 0 : i32
    return %arg0, %arg1, %c0_i32 : i32, i32, i32
  }
  func.func @transform_1(%arg0: i32, %arg1: i32) -> (i32, i32, i32) {
    %c0_i32 = arith.constant 0 : i32
    %c0_i32_0 = arith.constant 0 : i32
    return %arg0, %arg1, %c0_i32 : i32, i32, i32
  }
  func.func @transform_2(%arg0: i32, %arg1: i32) -> (i32, i32, i32) {
    %c0_i32 = arith.constant 0 : i32
    %c0_i32_0 = arith.constant 0 : i32
    return %arg0, %arg1, %c0_i32 : i32, i32, i32
  }
}

</mosaic_0001>

<bundles_post_ra>
// kernel: tpu_custom_call.1
= control target key start
LH: loop header
LB: loop body
LE: loop exit
PB: predicated region body
PF: predicated region fallthrough
CT: control target
= control target key end

     0   :  { %s1698_s9 = smov 0   ;;  %s1700_s10 = smov 0   ;;  %s2321_s0 = inlined_call_operand.vmem [shape: f32[1,2304,49], index: 0, kind: input, shape index: {}]   ;;  %s2322_s1 = inlined_call_operand.vmem [shape: f32[1,2304,1], index: 1, kind: input, shape index: {}]   ;;  %s2323_s2 = inlined_call_operand.vmem [shape: f32[1,2304,49], index: 2, kind: output, shape index: {}]  }
   0x1   :  { %s1702_s11 = smov 0  }
   0x2 LB: > { %s21_s12 = sadd.s32 1, %s1676_s10  ;;  %p1625_p0 = scmp.ge.s32.totalorder %s1680_s11, 1  ;;  %s1680_s11 = sphi %s1702_s11, %s12_s11   ;;  %s1676_s10 = sphi %s1700_s10, %s2325_s10   ;;  %s1672_s9 = sphi %s1698_s9, %s2324_s9  }
   0x3   : > { %p22_p1 = scmp.ge.s32.totalorder %s21_s12, 2  ;;  %p150_p2 = scmp.lt.s32.totalorder %s1680_s11, 3 }
   0x5   : > { %s2327_s12 = smov (%p22_p1, %s21_s12), 0  ;;  %p151_p3 = pnand %p1625_p0, %p150_p2 }
   0x6   : > { %s189_s13 = smul.u32 (!%p151_p3), 144, %s1672_s9 }
   0x7   : > { %154 = sbr.rel (%p151_p3) target bundleno = 427 (0x1ab), region = 28 }
   0x8   : > { %p192_p4 = scmp.lt.s32.totalorder (!%p151_p3), %s189_s13, 287 }
   0xc   : > { %v1682_v0 = vmov 0   ;;  %s2329_s13 = smov (!%p192_p4, %s189_s13), 287  ;;  %vm1371_vm0 = vcmask 400384  }
   0xd   : > { %1657 = vset.pattern.permute.xlu1 %v1682_v0  ;;  %1656 = vset.pattern.permute.xlu0 %v1682_v0  ;;  %s1716_s14 = sshll.u32 %s2329_s13, 3 }
   0xe   : > { %s1722_s17 = scalar_lea.vmem %s2322_s1, %s1716_s14  ;;  %s1790_s20 = scalar_lea.vmem %s2321_s0, %s1716_s14 }
   0xf   : > { %v365_v1 = vld [vmem:[%s1722_s17 + $0x10] sm:$0xff]  ;;  %v363_v2 = vld [vmem:[%s1722_s17] sm:$0xff]  ;;  %v366_v3 = vld [vmem:[%s1722_s17 + $0x18] sm:$0xff]  ;;  %s1800_s23 = scalar_lea.vmem %s2323_s2, %s1716_s14 }
  0x10   : > { %519 = vperm.xlu1 %1657, %v365_v1   ;;  %509 = vperm.xlu0 %1656, %v363_v2   ;;  %v364_v4 = vld [vmem:[%s1722_s17 + $0x8] sm:$0xff]  ;;  %v367_v6 = vld [vmem:[%s1722_s17 + $0x20] sm:$0xff]  ;;  %v370_v7 = vld [vmem:[%s1722_s17 + $0x38] sm:$0xff] }
  0x11   : > { %v368_v5 = vld [vmem:[%s1722_s17 + $0x28] sm:$0xff]  ;;  %v369_v8 = vld [vmem:[%s1722_s17 + $0x30] sm:$0xff]  ;;  %v371_v10 = vld [vmem:[%s1722_s17 + $0x40] sm:$0xff] }
  0x12   : > { %v372_v9 = vld [vmem:[%s1722_s17 + $0x48] sm:$0xff]  ;;  %v374_v11 = vld [vmem:[%s1722_s17 + $0x58] sm:$0xff]  ;;  %v373_v12 = vld [vmem:[%s1722_s17 + $0x50] sm:$0xff] }
  0x13   : > { %v376_v13 = vld [vmem:[%s1722_s17 + $0x68] sm:$0xff]  ;;  %v375_v14 = vld [vmem:[%s1722_s17 + $0x60] sm:$0xff]  ;;  %v378_v15 = vld [vmem:[%s1722_s17 + $0x78] sm:$0xff] }
  0x14   : > { %524 = vperm.xlu1 %1657, %v366_v3   ;;  %514 = vperm.xlu0 %1656, %v364_v4   ;;  %v377_v16 = vld [vmem:[%s1722_s17 + $0x70] sm:$0xff]  ;;  %v380_v17 = vld [vmem:[%s1722_s17 + $0x88] sm:$0xff]  ;;  %v379_v18 = vld [vmem:[%s1722_s17 + $0x80] sm:$0xff] }
  0x15   : > { %v382_v19 = vld [vmem:[%s1722_s17 + $0x98] sm:$0xff]  ;;  %v381_v20 = vld [vmem:[%s1722_s17 + $0x90] sm:$0xff]  ;;  %v384_v21 = vld [vmem:[%s1722_s17 + $0xa8] sm:$0xff] }
  0x16   : > { %v383_v22 = vld [vmem:[%s1722_s17 + $0xa0] sm:$0xff]  ;;  %v386_v23 = vld [vmem:[%s1722_s17 + $0xb8] sm:$0xff]  ;;  %v385_v24 = vld [vmem:[%s1722_s17 + $0xb0] sm:$0xff] }
  0x17   : > { %v388_v25 = vld [vmem:[%s1722_s17 + $0xc8] sm:$0xff]  ;;  %v387_v26 = vld [vmem:[%s1722_s17 + $0xc0] sm:$0xff]  ;;  %v390_v27 = vld [vmem:[%s1722_s17 + $0xd8] sm:$0xff] }
  0x18   : > { %534 = vperm.xlu1 %1657, %v368_v5   ;;  %529 = vperm.xlu0 %1656, %v367_v6   ;;  %v389_v28 = vld [vmem:[%s1722_s17 + $0xd0] sm:$0xff]  ;;  %v392_v29 = vld [vmem:[%s1722_s17 + $0xe8] sm:$0xff]  ;;  %v391_v30 = vld [vmem:[%s1722_s17 + $0xe0] sm:$0xff] }
  0x19   : > { %v394_v31 = vld [vmem:[%s1722_s17 + $0xf8] sm:$0xff]  ;;  %v393_v32 = vld [vmem:[%s1722_s17 + $0xf0] sm:$0xff]  ;;  %v396_v33 = vld [vmem:[%s1722_s17 + $0x108] sm:$0xff] }
  0x1a   : > { %v395_v34 = vld [vmem:[%s1722_s17 + $0x100] sm:$0xff]  ;;  %v398_v35 = vld [vmem:[%s1722_s17 + $0x118] sm:$0xff]  ;;  %v397_v36 = vld [vmem:[%s1722_s17 + $0x110] sm:$0xff] }
  0x1b   : > { %v400_v37 = vld [vmem:[%s1722_s17 + $0x128] sm:$0xff]  ;;  %v399_v38 = vld [vmem:[%s1722_s17 + $0x120] sm:$0xff]  ;;  %v402_v39 = vld [vmem:[%s1722_s17 + $0x138] sm:$0xff] }
  0x1c   : > { %544 = vperm.xlu1 %1657, %v370_v7   ;;  %539 = vperm.xlu0 %1656, %v369_v8   ;;  %v401_v40 = vld [vmem:[%s1722_s17 + $0x130] sm:$0xff]  ;;  %v404_v41 = vld [vmem:[%s1722_s17 + $0x148] sm:$0xff]  ;;  %v403_v42 = vld [vmem:[%s1722_s17 + $0x140] sm:$0xff] }
  0x1d   : > { %v406_v43 = vld [vmem:[%s1722_s17 + $0x158] sm:$0xff]  ;;  %v405_v44 = vld [vmem:[%s1722_s17 + $0x150] sm:$0xff]  ;;  %v408_v45 = vld [vmem:[%s1722_s17 + $0x168] sm:$0xff] }
  0x1e   : > { %v407_v46 = vld [vmem:[%s1722_s17 + $0x160] sm:$0xff]  ;;  %v410_v47 = vld [vmem:[%s1722_s17 + $0x178] sm:$0xff]  ;;  %v409_v48 = vld [vmem:[%s1722_s17 + $0x170] sm:$0xff] }
  0x1f   : > { %v412_v49 = vld [vmem:[%s1722_s17 + $0x188] sm:$0xff]  ;;  %v411_v50 = vld [vmem:[%s1722_s17 + $0x180] sm:$0xff]  ;;  %v414_v51 = vld [vmem:[%s1722_s17 + $0x198] sm:$0xff] }
  0x20   : > { %554 = vperm.xlu1 %1657, %v372_v9   ;;  %549 = vperm.xlu0 %1656, %v371_v10   ;;  %v413_v52 = vld [vmem:[%s1722_s17 + $0x190] sm:$0xff]  ;;  %v416_v53 = vld [vmem:[%s1722_s17 + $0x1a8] sm:$0xff]  ;;  %v415_v54 = vld [vmem:[%s1722_s17 + $0x1a0] sm:$0xff] }
  0x21   : > { %v418_v55 = vld [vmem:[%s1722_s17 + $0x1b8] sm:$0xff]  ;;  %v417_v56 = vld [vmem:[%s1722_s17 + $0x1b0] sm:$0xff]  ;;  %v420_v57 = vld [vmem:[%s1722_s17 + $0x1c8] sm:$0xff] }
  0x22   : > { %v419_v58 = vld [vmem:[%s1722_s17 + $0x1c0] sm:$0xff]  ;;  %v422_v59 = vld [vmem:[%s1722_s17 + $0x1d8] sm:$0xff]  ;;  %v421_v60 = vld [vmem:[%s1722_s17 + $0x1d0] sm:$0xff] }
  0x23   : > { %v424_v61 = vld [vmem:[%s1722_s17 + $0x1e8] sm:$0xff]  ;;  %v423_v62 = vld [vmem:[%s1722_s17 + $0x1e0] sm:$0xff]  ;;  %v221_v63 = vld [vmem:[%s1790_s20 + $0x10] sm:$0xff] }
  0x24   : > { %564 = vperm.xlu1 %1657, %v374_v11   ;;  %559 = vperm.xlu0 %1656, %v373_v12   ;;  %v219_v0 = vld [vmem:[%s1790_s20] sm:$0xff]  ;;  %v426_v1 = vld [vmem:[%s1722_s17 + $0x1f8] sm:$0xff]  ;;  %v425_v2 = vld [vmem:[%s1722_s17 + $0x1f0] sm:$0xff] }
  0x25   : > { %v222_v7 = vld [vmem:[%s1790_s20 + $0x18] sm:$0xff]  ;;  %v220_v8 = vld [vmem:[%s1790_s20 + $0x8] sm:$0xff]  ;;  %v427_v10 = vld [vmem:[%s1722_s17 + $0x200] sm:$0xff] }
  0x26   : > { %v428_v9 = vld [vmem:[%s1722_s17 + $0x208] sm:$0xff] }
  0x28   : > { %574 = vperm.xlu1 %1657, %v376_v13   ;;  %569 = vperm.xlu0 %1656, %v375_v14  }
  0x2c   : > { %584 = vperm.xlu1 %1657, %v378_v15   ;;  %579 = vperm.xlu0 %1656, %v377_v16   ;;  %v224_v15 = vld [vmem:[%s1790_s20 + $0x28] sm:$0xff]  ;;  %v223_v16 = vld [vmem:[%s1790_s20 + $0x20] sm:$0xff] }
  0x30   : > { %594 = vperm.xlu1 %1657, %v380_v17   ;;  %589 = vperm.xlu0 %1656, %v379_v18   ;;  %v430_v17 = vld [vmem:[%s1722_s17 + $0x218] sm:$0xff]  ;;  %v429_v18 = vld [vmem:[%s1722_s17 + $0x210] sm:$0xff] }
  0x34   : > { %604 = vperm.xlu1 %1657, %v382_v19   ;;  %599 = vperm.xlu0 %1656, %v381_v20  }
  0x38   : > { %614 = vperm.xlu1 %1657, %v384_v21   ;;  %609 = vperm.xlu0 %1656, %v383_v22  }
  0x3c   : > { %624 = vperm.xlu1 %1657, %v386_v23   ;;  %619 = vperm.xlu0 %1656, %v385_v24   ;;  %v226_v23 = vld [vmem:[%s1790_s20 + $0x38] sm:$0xff]  ;;  %v225_v24 = vld [vmem:[%s1790_s20 + $0x30] sm:$0xff] }
  0x40   : > { %634 = vperm.xlu1 %1657, %v388_v25   ;;  %629 = vperm.xlu0 %1656, %v387_v26   ;;  %v432_v25 = vld [vmem:[%s1722_s17 + $0x228] sm:$0xff]  ;;  %v431_v26 = vld [vmem:[%s1722_s17 + $0x220] sm:$0xff] }
  0x44   : > { %644 = vperm.xlu1 %1657, %v390_v27   ;;  %639 = vperm.xlu0 %1656, %v389_v28  }
  0x48   : > { %654 = vperm.xlu1 %1657, %v392_v29   ;;  %649 = vperm.xlu0 %1656, %v391_v30  }
  0x4c   : > { %664 = vperm.xlu1 %1657, %v394_v31   ;;  %659 = vperm.xlu0 %1656, %v393_v32   ;;  %v228_v31 = vld [vmem:[%s1790_s20 + $0x48] sm:$0xff]  ;;  %v227_v32 = vld [vmem:[%s1790_s20 + $0x40] sm:$0xff] }
  0x50   : > { %674 = vperm.xlu1 %1657, %v396_v33   ;;  %669 = vperm.xlu0 %1656, %v395_v34   ;;  %v434_v33 = vld [vmem:[%s1722_s17 + $0x238] sm:$0xff]  ;;  %v433_v34 = vld [vmem:[%s1722_s17 + $0x230] sm:$0xff] }
  0x54   : > { %684 = vperm.xlu1 %1657, %v398_v35   ;;  %679 = vperm.xlu0 %1656, %v397_v36  }
  0x58   : > { %694 = vperm.xlu1 %1657, %v400_v37   ;;  %689 = vperm.xlu0 %1656, %v399_v38  }
  0x5c   : > { %704 = vperm.xlu1 %1657, %v402_v39   ;;  %699 = vperm.xlu0 %1656, %v401_v40   ;;  %v230_v39 = vld [vmem:[%s1790_s20 + $0x58] sm:$0xff]  ;;  %v229_v40 = vld [vmem:[%s1790_s20 + $0x50] sm:$0xff] }
  0x60   : > { %714 = vperm.xlu1 %1657, %v404_v41   ;;  %709 = vperm.xlu0 %1656, %v403_v42   ;;  %v436_v41 = vld [vmem:[%s1722_s17 + $0x248] sm:$0xff]  ;;  %v435_v42 = vld [vmem:[%s1722_s17 + $0x240] sm:$0xff] }
  0x64   : > { %724 = vperm.xlu1 %1657, %v406_v43   ;;  %719 = vperm.xlu0 %1656, %v405_v44  }
  0x68   : > { %734 = vperm.xlu1 %1657, %v408_v45   ;;  %729 = vperm.xlu0 %1656, %v407_v46  }
  0x6c   : > { %744 = vperm.xlu1 %1657, %v410_v47   ;;  %739 = vperm.xlu0 %1656, %v409_v48   ;;  %v232_v47 = vld [vmem:[%s1790_s20 + $0x68] sm:$0xff]  ;;  %v231_v48 = vld [vmem:[%s1790_s20 + $0x60] sm:$0xff] }
  0x70   : > { %754 = vperm.xlu1 %1657, %v412_v49   ;;  %749 = vperm.xlu0 %1656, %v411_v50   ;;  %v438_v49 = vld [vmem:[%s1722_s17 + $0x258] sm:$0xff]  ;;  %v437_v50 = vld [vmem:[%s1722_s17 + $0x250] sm:$0xff] }
  0x74   : > { %764 = vperm.xlu1 %1657, %v414_v51   ;;  %759 = vperm.xlu0 %1656, %v413_v52  }
  0x78   : > { %774 = vperm.xlu1 %1657, %v416_v53   ;;  %769 = vperm.xlu0 %1656, %v415_v54  }
  0x7c   : > { %784 = vperm.xlu1 %1657, %v418_v55   ;;  %779 = vperm.xlu0 %1656, %v417_v56   ;;  %v234_v55 = vld [vmem:[%s1790_s20 + $0x78] sm:$0xff]  ;;  %v233_v56 = vld [vmem:[%s1790_s20 + $0x70] sm:$0xff] }
  0x80   : > { %794 = vperm.xlu1 %1657, %v420_v57   ;;  %789 = vperm.xlu0 %1656, %v419_v58   ;;  %v440_v57 = vld [vmem:[%s1722_s17 + $0x268] sm:$0xff]  ;;  %v439_v58 = vld [vmem:[%s1722_s17 + $0x260] sm:$0xff] }
  0x84   : > { %804 = vperm.xlu1 %1657, %v422_v59   ;;  %799 = vperm.xlu0 %1656, %v421_v60  }
  0x88   : > { %814 = vperm.xlu1 %1657, %v424_v61   ;;  %809 = vperm.xlu0 %1656, %v423_v62  }
  0x8b   : > { %v520_v3 = vpop.permute.xlu1 %519  ;;  %v510_v4 = vpop.permute.xlu0 %509 }
  0x8c   : > { %v1229_v5 = vmul.f32 %v520_v3, %v221_v63  ;;  %v1227_v6 = vmul.f32 %v510_v4, %v219_v0  ;;  %824 = vperm.xlu1 %1657, %v426_v1   ;;  %819 = vperm.xlu0 %1656, %v425_v2   ;;  %v236_v63 = vld [vmem:[%s1790_s20 + $0x88] sm:$0xff]  ;;  %v235_v0 = vld [vmem:[%s1790_s20 + $0x80] sm:$0xff]  ;;  %v442_v1 = vld [vmem:[%s1722_s17 + $0x278] sm:$0xff] }
  0x8d   : > { %v441_v2 = vld [vmem:[%s1722_s17 + $0x270] sm:$0xff] }
  0x8e   : > { %1374 = vst.msk [vmem:[%s1800_s23 + $0x10] sm:$0xff] %vm1371_vm0, %v1229_v5  ;;  %1372 = vst.msk [vmem:[%s1800_s23] sm:$0xff] %vm1371_vm0, %v1227_v6 }
  0x8f   : > { %v525_v11 = vpop.permute.xlu1 %524  ;;  %v515_v12 = vpop.permute.xlu0 %514 }
  0x90   : > { %v1230_v13 = vmul.f32 %v525_v11, %v222_v7  ;;  %v1228_v14 = vmul.f32 %v515_v12, %v220_v8  ;;  %834 = vperm.xlu1 %1657, %v428_v9   ;;  %829 = vperm.xlu0 %1656, %v427_v10   ;;  %v238_v7 = vld [vmem:[%s1790_s20 + $0x98] sm:$0xff]  ;;  %v237_v8 = vld [vmem:[%s1790_s20 + $0x90] sm:$0xff]  ;;  %v444_v9 = vld [vmem:[%s1722_s17 + $0x288] sm:$0xff] }
  0x91   : > { %v443_v10 = vld [vmem:[%s1722_s17 + $0x280] sm:$0xff] }
  0x92   : > { %1375 = vst.msk [vmem:[%s1800_s23 + $0x18] sm:$0xff] %vm1371_vm0, %v1230_v13  ;;  %1373 = vst.msk [vmem:[%s1800_s23 + $0x8] sm:$0xff] %vm1371_vm0, %v1228_v14 }
  0x93   : > { %v535_v19 = vpop.permute.xlu1 %534  ;;  %v530_v20 = vpop.permute.xlu0 %529 }
  0x94   : > { %v1232_v21 = vmul.f32 %v535_v19, %v224_v15  ;;  %v1231_v22 = vmul.f32 %v530_v20, %v223_v16  ;;  %844 = vperm.xlu1 %1657, %v430_v17   ;;  %839 = vperm.xlu0 %1656, %v429_v18   ;;  %v240_v15 = vld [vmem:[%s1790_s20 + $0xa8] sm:$0xff]  ;;  %v239_v16 = vld [vmem:[%s1790_s20 + $0xa0] sm:$0xff]  ;;  %v446_v17 = vld [vmem:[%s1722_s17 + $0x298] sm:$0xff] }
  0x95   : > { %v445_v18 = vld [vmem:[%s1722_s17 + $0x290] sm:$0xff] }
  0x96   : > { %1377 = vst.msk [vmem:[%s1800_s23 + $0x28] sm:$0xff] %vm1371_vm0, %v1232_v21  ;;  %1376 = vst.msk [vmem:[%s1800_s23 + $0x20] sm:$0xff] %vm1371_vm0, %v1231_v22 }
  0x97   : > { %v545_v27 = vpop.permute.xlu1 %544  ;;  %v540_v28 = vpop.permute.xlu0 %539 }
  0x98   : > { %v1234_v29 = vmul.f32 %v545_v27, %v226_v23  ;;  %v1233_v30 = vmul.f32 %v540_v28, %v225_v24  ;;  %854 = vperm.xlu1 %1657, %v432_v25   ;;  %849 = vperm.xlu0 %1656, %v431_v26   ;;  %v242_v23 = vld [vmem:[%s1790_s20 + $0xb8] sm:$0xff]  ;;  %v241_v24 = vld [vmem:[%s1790_s20 + $0xb0] sm:$0xff]  ;;  %v448_v25 = vld [vmem:[%s1722_s17 + $0x2a8] sm:$0xff] }
  0x99   : > { %v447_v26 = vld [vmem:[%s1722_s17 + $0x2a0] sm:$0xff] }
  0x9a   : > { %1379 = vst.msk [vmem:[%s1800_s23 + $0x38] sm:$0xff] %vm1371_vm0, %v1234_v29  ;;  %1378 = vst.msk [vmem:[%s1800_s23 + $0x30] sm:$0xff] %vm1371_vm0, %v1233_v30 }
  0x9b   : > { %v555_v35 = vpop.permute.xlu1 %554  ;;  %v550_v36 = vpop.permute.xlu0 %549 }
  0x9c   : > { %v1236_v37 = vmul.f32 %v555_v35, %v228_v31  ;;  %v1235_v38 = vmul.f32 %v550_v36, %v227_v32  ;;  %864 = vperm.xlu1 %1657, %v434_v33   ;;  %859 = vperm.xlu0 %1656, %v433_v34   ;;  %v244_v31 = vld [vmem:[%s1790_s20 + $0xc8] sm:$0xff]  ;;  %v243_v32 = vld [vmem:[%s1790_s20 + $0xc0] sm:$0xff]  ;;  %v450_v33 = vld [vmem:[%s1722_s17 + $0x2b8] sm:$0xff] }
  0x9d   : > { %v449_v34 = vld [vmem:[%s1722_s17 + $0x2b0] sm:$0xff] }
  0x9e   : > { %1381 = vst.msk [vmem:[%s1800_s23 + $0x48] sm:$0xff] %vm1371_vm0, %v1236_v37  ;;  %1380 = vst.msk [vmem:[%s1800_s23 + $0x40] sm:$0xff] %vm1371_vm0, %v1235_v38 }
  0x9f   : > { %v565_v43 = vpop.permute.xlu1 %564  ;;  %v560_v44 = vpop.permute.xlu0 %559 }
  0xa0   : > { %v1238_v45 = vmul.f32 %v565_v43, %v230_v39  ;;  %v1237_v46 = vmul.f32 %v560_v44, %v229_v40  ;;  %874 = vperm.xlu1 %1657, %v436_v41   ;;  %869 = vperm.xlu0 %1656, %v435_v42   ;;  %v246_v39 = vld [vmem:[%s1790_s20 + $0xd8] sm:$0xff]  ;;  %v245_v40 = vld [vmem:[%s1790_s20 + $0xd0] sm:$0xff]  ;;  %v452_v41 = vld [vmem:[%s1722_s17 + $0x2c8] sm:$0xff] }
  0xa1   : > { %v451_v42 = vld [vmem:[%s1722_s17 + $0x2c0] sm:$0xff] }
  0xa2   : > { %1383 = vst.msk [vmem:[%s1800_s23 + $0x58] sm:$0xff] %vm1371_vm0, %v1238_v45  ;;  %1382 = vst.msk [vmem:[%s1800_s23 + $0x50] sm:$0xff] %vm1371_vm0, %v1237_v46 }
  0xa3   : > { %v575_v51 = vpop.permute.xlu1 %574  ;;  %v570_v52 = vpop.permute.xlu0 %569 }
  0xa4   : > { %v1240_v53 = vmul.f32 %v575_v51, %v232_v47  ;;  %v1239_v54 = vmul.f32 %v570_v52, %v231_v48  ;;  %884 = vperm.xlu1 %1657, %v438_v49   ;;  %879 = vperm.xlu0 %1656, %v437_v50   ;;  %v248_v47 = vld [vmem:[%s1790_s20 + $0xe8] sm:$0xff]  ;;  %v247_v48 = vld [vmem:[%s1790_s20 + $0xe0] sm:$0xff]  ;;  %v454_v49 = vld [vmem:[%s1722_s17 + $0x2d8] sm:$0xff] }
  0xa5   : > { %v453_v50 = vld [vmem:[%s1722_s17 + $0x2d0] sm:$0xff] }
  0xa6   : > { %1385 = vst.msk [vmem:[%s1800_s23 + $0x68] sm:$0xff] %vm1371_vm0, %v1240_v53  ;;  %1384 = vst.msk [vmem:[%s1800_s23 + $0x60] sm:$0xff] %vm1371_vm0, %v1239_v54 }
  0xa7   : > { %v585_v59 = vpop.permute.xlu1 %584  ;;  %v580_v60 = vpop.permute.xlu0 %579 }
  0xa8   : > { %v1242_v61 = vmul.f32 %v585_v59, %v234_v55  ;;  %v1241_v62 = vmul.f32 %v580_v60, %v233_v56  ;;  %894 = vperm.xlu1 %1657, %v440_v57   ;;  %889 = vperm.xlu0 %1656, %v439_v58   ;;  %v250_v55 = vld [vmem:[%s1790_s20 + $0xf8] sm:$0xff]  ;;  %v249_v56 = vld [vmem:[%s1790_s20 + $0xf0] sm:$0xff]  ;;  %v456_v57 = vld [vmem:[%s1722_s17 + $0x2e8] sm:$0xff] }
  0xa9   : > { %v455_v58 = vld [vmem:[%s1722_s17 + $0x2e0] sm:$0xff] }
  0xaa   : > { %1387 = vst.msk [vmem:[%s1800_s23 + $0x78] sm:$0xff] %vm1371_vm0, %v1242_v61  ;;  %1386 = vst.msk [vmem:[%s1800_s23 + $0x70] sm:$0xff] %vm1371_vm0, %v1241_v62 }
  0xab   : > { %v595_v3 = vpop.permute.xlu1 %594  ;;  %v590_v4 = vpop.permute.xlu0 %589 }
  0xac   : > { %v1244_v5 = vmul.f32 %v595_v3, %v236_v63  ;;  %v1243_v6 = vmul.f32 %v590_v4, %v235_v0  ;;  %904 = vperm.xlu1 %1657, %v442_v1   ;;  %899 = vperm.xlu0 %1656, %v441_v2   ;;  %v252_v63 = vld [vmem:[%s1790_s20 + $0x108] sm:$0xff]  ;;  %v251_v0 = vld [vmem:[%s1790_s20 + $0x100] sm:$0xff]  ;;  %v458_v1 = vld [vmem:[%s1722_s17 + $0x2f8] sm:$0xff] }
  0xad   : > { %v457_v2 = vld [vmem:[%s1722_s17 + $0x2f0] sm:$0xff] }
  0xae   : > { %1389 = vst.msk [vmem:[%s1800_s23 + $0x88] sm:$0xff] %vm1371_vm0, %v1244_v5  ;;  %1388 = vst.msk [vmem:[%s1800_s23 + $0x80] sm:$0xff] %vm1371_vm0, %v1243_v6 }
  0xaf   : > { %v605_v11 = vpop.permute.xlu1 %604  ;;  %v600_v12 = vpop.permute.xlu0 %599 }
  0xb0   : > { %v1246_v13 = vmul.f32 %v605_v11, %v238_v7  ;;  %v1245_v14 = vmul.f32 %v600_v12, %v237_v8  ;;  %914 = vperm.xlu1 %1657, %v444_v9   ;;  %909 = vperm.xlu0 %1656, %v443_v10   ;;  %v254_v7 = vld [vmem:[%s1790_s20 + $0x118] sm:$0xff]  ;;  %v253_v8 = vld [vmem:[%s1790_s20 + $0x110] sm:$0xff]  ;;  %v460_v9 = vld [vmem:[%s1722_s17 + $0x308] sm:$0xff] }
  0xb1   : > { %v459_v10 = vld [vmem:[%s1722_s17 + $0x300] sm:$0xff] }
  0xb2   : > { %1391 = vst.msk [vmem:[%s1800_s23 + $0x98] sm:$0xff] %vm1371_vm0, %v1246_v13  ;;  %1390 = vst.msk [vmem:[%s1800_s23 + $0x90] sm:$0xff] %vm1371_vm0, %v1245_v14 }
  0xb3   : > { %v615_v19 = vpop.permute.xlu1 %614  ;;  %v610_v20 = vpop.permute.xlu0 %609 }
  0xb4   : > { %v1248_v21 = vmul.f32 %v615_v19, %v240_v15  ;;  %v1247_v22 = vmul.f32 %v610_v20, %v239_v16  ;;  %924 = vperm.xlu1 %1657, %v446_v17   ;;  %919 = vperm.xlu0 %1656, %v445_v18   ;;  %v256_v15 = vld [vmem:[%s1790_s20 + $0x128] sm:$0xff]  ;;  %v255_v16 = vld [vmem:[%s1790_s20 + $0x120] sm:$0xff]  ;;  %v462_v17 = vld [vmem:[%s1722_s17 + $0x318] sm:$0xff] }
  0xb5   : > { %v461_v18 = vld [vmem:[%s1722_s17 + $0x310] sm:$0xff] }
  0xb6   : > { %1393 = vst.msk [vmem:[%s1800_s23 + $0xa8] sm:$0xff] %vm1371_vm0, %v1248_v21  ;;  %1392 = vst.msk [vmem:[%s1800_s23 + $0xa0] sm:$0xff] %vm1371_vm0, %v1247_v22 }
  0xb7   : > { %v625_v27 = vpop.permute.xlu1 %624  ;;  %v620_v28 = vpop.permute.xlu0 %619 }
  0xb8   : > { %v1250_v29 = vmul.f32 %v625_v27, %v242_v23  ;;  %v1249_v30 = vmul.f32 %v620_v28, %v241_v24  ;;  %934 = vperm.xlu1 %1657, %v448_v25   ;;  %929 = vperm.xlu0 %1656, %v447_v26   ;;  %v258_v23 = vld [vmem:[%s1790_s20 + $0x138] sm:$0xff]  ;;  %v257_v24 = vld [vmem:[%s1790_s20 + $0x130] sm:$0xff]  ;;  %v464_v25 = vld [vmem:[%s1722_s17 + $0x328] sm:$0xff] }
  0xb9   : > { %v463_v26 = vld [vmem:[%s1722_s17 + $0x320] sm:$0xff] }
  0xba   : > { %1395 = vst.msk [vmem:[%s1800_s23 + $0xb8] sm:$0xff] %vm1371_vm0, %v1250_v29  ;;  %1394 = vst.msk [vmem:[%s1800_s23 + $0xb0] sm:$0xff] %vm1371_vm0, %v1249_v30 }
  0xbb   : > { %v635_v35 = vpop.permute.xlu1 %634  ;;  %v630_v36 = vpop.permute.xlu0 %629 }
  0xbc   : > { %v1252_v37 = vmul.f32 %v635_v35, %v244_v31  ;;  %v1251_v38 = vmul.f32 %v630_v36, %v243_v32  ;;  %944 = vperm.xlu1 %1657, %v450_v33   ;;  %939 = vperm.xlu0 %1656, %v449_v34   ;;  %v260_v31 = vld [vmem:[%s1790_s20 + $0x148] sm:$0xff]  ;;  %v259_v32 = vld [vmem:[%s1790_s20 + $0x140] sm:$0xff]  ;;  %v466_v33 = vld [vmem:[%s1722_s17 + $0x338] sm:$0xff] }
  0xbd   : > { %v465_v34 = vld [vmem:[%s1722_s17 + $0x330] sm:$0xff] }
  0xbe   : > { %1397 = vst.msk [vmem:[%s1800_s23 + $0xc8] sm:$0xff] %vm1371_vm0, %v1252_v37  ;;  %1396 = vst.msk [vmem:[%s1800_s23 + $0xc0] sm:$0xff] %vm1371_vm0, %v1251_v38 }
  0xbf   : > { %v645_v43 = vpop.permute.xlu1 %644  ;;  %v640_v44 = vpop.permute.xlu0 %639 }
  0xc0   : > { %v1254_v45 = vmul.f32 %v645_v43, %v246_v39  ;;  %v1253_v46 = vmul.f32 %v640_v44, %v245_v40  ;;  %954 = vperm.xlu1 %1657, %v452_v41   ;;  %949 = vperm.xlu0 %1656, %v451_v42   ;;  %v262_v39 = vld [vmem:[%s1790_s20 + $0x158] sm:$0xff]  ;;  %v261_v40 = vld [vmem:[%s1790_s20 + $0x150] sm:$0xff]  ;;  %v468_v41 = vld [vmem:[%s1722_s17 + $0x348] sm:$0xff] }
  0xc1   : > { %v467_v42 = vld [vmem:[%s1722_s17 + $0x340] sm:$0xff] }
  0xc2   : > { %1399 = vst.msk [vmem:[%s1800_s23 + $0xd8] sm:$0xff] %vm1371_vm0, %v1254_v45  ;;  %1398 = vst.msk [vmem:[%s1800_s23 + $0xd0] sm:$0xff] %vm1371_vm0, %v1253_v46 }
  0xc3   : > { %v655_v51 = vpop.permute.xlu1 %654  ;;  %v650_v52 = vpop.permute.xlu0 %649 }
  0xc4   : > { %v1256_v53 = vmul.f32 %v655_v51, %v248_v47  ;;  %v1255_v54 = vmul.f32 %v650_v52, %v247_v48  ;;  %964 = vperm.xlu1 %1657, %v454_v49   ;;  %959 = vperm.xlu0 %1656, %v453_v50   ;;  %v264_v47 = vld [vmem:[%s1790_s20 + $0x168] sm:$0xff]  ;;  %v263_v48 = vld [vmem:[%s1790_s20 + $0x160] sm:$0xff]  ;;  %v470_v49 = vld [vmem:[%s1722_s17 + $0x358] sm:$0xff] }
  0xc5   : > { %v469_v50 = vld [vmem:[%s1722_s17 + $0x350] sm:$0xff] }
  0xc6   : > { %1401 = vst.msk [vmem:[%s1800_s23 + $0xe8] sm:$0xff] %vm1371_vm0, %v1256_v53  ;;  %1400 = vst.msk [vmem:[%s1800_s23 + $0xe0] sm:$0xff] %vm1371_vm0, %v1255_v54 }
  0xc7   : > { %v665_v59 = vpop.permute.xlu1 %664  ;;  %v660_v60 = vpop.permute.xlu0 %659 }
  0xc8   : > { %v1258_v61 = vmul.f32 %v665_v59, %v250_v55  ;;  %v1257_v62 = vmul.f32 %v660_v60, %v249_v56  ;;  %974 = vperm.xlu1 %1657, %v456_v57   ;;  %969 = vperm.xlu0 %1656, %v455_v58   ;;  %v266_v55 = vld [vmem:[%s1790_s20 + $0x178] sm:$0xff]  ;;  %v265_v56 = vld [vmem:[%s1790_s20 + $0x170] sm:$0xff]  ;;  %v472_v57 = vld [vmem:[%s1722_s17 + $0x368] sm:$0xff] }
  0xc9   : > { %v471_v58 = vld [vmem:[%s1722_s17 + $0x360] sm:$0xff] }
  0xca   : > { %1403 = vst.msk [vmem:[%s1800_s23 + $0xf8] sm:$0xff] %vm1371_vm0, %v1258_v61  ;;  %1402 = vst.msk [vmem:[%s1800_s23 + $0xf0] sm:$0xff] %vm1371_vm0, %v1257_v62 }
  0xcb   : > { %v675_v3 = vpop.permute.xlu1 %674  ;;  %v670_v4 = vpop.permute.xlu0 %669 }
  0xcc   : > { %v1260_v5 = vmul.f32 %v675_v3, %v252_v63  ;;  %v1259_v6 = vmul.f32 %v670_v4, %v251_v0  ;;  %984 = vperm.xlu1 %1657, %v458_v1   ;;  %979 = vperm.xlu0 %1656, %v457_v2   ;;  %v268_v63 = vld [vmem:[%s1790_s20 + $0x188] sm:$0xff]  ;;  %v267_v0 = vld [vmem:[%s1790_s20 + $0x180] sm:$0xff]  ;;  %v474_v1 = vld [vmem:[%s1722_s17 + $0x378] sm:$0xff] }
  0xcd   : > { %v473_v2 = vld [vmem:[%s1722_s17 + $0x370] sm:$0xff] }
  0xce   : > { %1405 = vst.msk [vmem:[%s1800_s23 + $0x108] sm:$0xff] %vm1371_vm0, %v1260_v5  ;;  %1404 = vst.msk [vmem:[%s1800_s23 + $0x100] sm:$0xff] %vm1371_vm0, %v1259_v6 }
  0xcf   : > { %v685_v11 = vpop.permute.xlu1 %684  ;;  %v680_v12 = vpop.permute.xlu0 %679 }
  0xd0   : > { %v1262_v13 = vmul.f32 %v685_v11, %v254_v7  ;;  %v1261_v14 = vmul.f32 %v680_v12, %v253_v8  ;;  %994 = vperm.xlu1 %1657, %v460_v9   ;;  %989 = vperm.xlu0 %1656, %v459_v10   ;;  %v270_v7 = vld [vmem:[%s1790_s20 + $0x198] sm:$0xff]  ;;  %v269_v8 = vld [vmem:[%s1790_s20 + $0x190] sm:$0xff]  ;;  %v476_v9 = vld [vmem:[%s1722_s17 + $0x388] sm:$0xff] }
  0xd1   : > { %v475_v10 = vld [vmem:[%s1722_s17 + $0x380] sm:$0xff] }
  0xd2   : > { %1407 = vst.msk [vmem:[%s1800_s23 + $0x118] sm:$0xff] %vm1371_vm0, %v1262_v13  ;;  %1406 = vst.msk [vmem:[%s1800_s23 + $0x110] sm:$0xff] %vm1371_vm0, %v1261_v14 }
  0xd3   : > { %v695_v19 = vpop.permute.xlu1 %694  ;;  %v690_v20 = vpop.permute.xlu0 %689 }
  0xd4   : > { %v1264_v21 = vmul.f32 %v695_v19, %v256_v15  ;;  %v1263_v22 = vmul.f32 %v690_v20, %v255_v16  ;;  %1004 = vperm.xlu1 %1657, %v462_v17   ;;  %999 = vperm.xlu0 %1656, %v461_v18   ;;  %v272_v15 = vld [vmem:[%s1790_s20 + $0x1a8] sm:$0xff]  ;;  %v271_v16 = vld [vmem:[%s1790_s20 + $0x1a0] sm:$0xff]  ;;  %v478_v17 = vld [vmem:[%s1722_s17 + $0x398] sm:$0xff] }
  0xd5   : > { %v477_v18 = vld [vmem:[%s1722_s17 + $0x390] sm:$0xff] }
  0xd6   : > { %1409 = vst.msk [vmem:[%s1800_s23 + $0x128] sm:$0xff] %vm1371_vm0, %v1264_v21  ;;  %1408 = vst.msk [vmem:[%s1800_s23 + $0x120] sm:$0xff] %vm1371_vm0, %v1263_v22 }
  0xd7   : > { %v705_v27 = vpop.permute.xlu1 %704  ;;  %v700_v28 = vpop.permute.xlu0 %699 }
  0xd8   : > { %v1266_v29 = vmul.f32 %v705_v27, %v258_v23  ;;  %v1265_v30 = vmul.f32 %v700_v28, %v257_v24  ;;  %1014 = vperm.xlu1 %1657, %v464_v25   ;;  %1009 = vperm.xlu0 %1656, %v463_v26   ;;  %v274_v23 = vld [vmem:[%s1790_s20 + $0x1b8] sm:$0xff]  ;;  %v273_v24 = vld [vmem:[%s1790_s20 + $0x1b0] sm:$0xff]  ;;  %v480_v25 = vld [vmem:[%s1722_s17 + $0x3a8] sm:$0xff] }
  0xd9   : > { %v479_v26 = vld [vmem:[%s1722_s17 + $0x3a0] sm:$0xff] }
  0xda   : > { %1411 = vst.msk [vmem:[%s1800_s23 + $0x138] sm:$0xff] %vm1371_vm0, %v1266_v29  ;;  %1410 = vst.msk [vmem:[%s1800_s23 + $0x130] sm:$0xff] %vm1371_vm0, %v1265_v30 }
  0xdb   : > { %v715_v35 = vpop.permute.xlu1 %714  ;;  %v710_v36 = vpop.permute.xlu0 %709 }
  0xdc   : > { %v1268_v37 = vmul.f32 %v715_v35, %v260_v31  ;;  %v1267_v38 = vmul.f32 %v710_v36, %v259_v32  ;;  %1024 = vperm.xlu1 %1657, %v466_v33   ;;  %1019 = vperm.xlu0 %1656, %v465_v34   ;;  %v276_v31 = vld [vmem:[%s1790_s20 + $0x1c8] sm:$0xff]  ;;  %v275_v32 = vld [vmem:[%s1790_s20 + $0x1c0] sm:$0xff]  ;;  %v482_v33 = vld [vmem:[%s1722_s17 + $0x3b8] sm:$0xff] }
  0xdd   : > { %v481_v34 = vld [vmem:[%s1722_s17 + $0x3b0] sm:$0xff] }
  0xde   : > { %1413 = vst.msk [vmem:[%s1800_s23 + $0x148] sm:$0xff] %vm1371_vm0, %v1268_v37  ;;  %1412 = vst.msk [vmem:[%s1800_s23 + $0x140] sm:$0xff] %vm1371_vm0, %v1267_v38 }
  0xdf   : > { %v725_v43 = vpop.permute.xlu1 %724  ;;  %v720_v44 = vpop.permute.xlu0 %719 }
  0xe0   : > { %v1270_v45 = vmul.f32 %v725_v43, %v262_v39  ;;  %v1269_v46 = vmul.f32 %v720_v44, %v261_v40  ;;  %1034 = vperm.xlu1 %1657, %v468_v41   ;;  %1029 = vperm.xlu0 %1656, %v467_v42   ;;  %v278_v39 = vld [vmem:[%s1790_s20 + $0x1d8] sm:$0xff]  ;;  %v277_v40 = vld [vmem:[%s1790_s20 + $0x1d0] sm:$0xff]  ;;  %v484_v41 = vld [vmem:[%s1722_s17 + $0x3c8] sm:$0xff] }
  0xe1   : > { %v483_v42 = vld [vmem:[%s1722_s17 + $0x3c0] sm:$0xff] }
  0xe2   : > { %1415 = vst.msk [vmem:[%s1800_s23 + $0x158] sm:$0xff] %vm1371_vm0, %v1270_v45  ;;  %1414 = vst.msk [vmem:[%s1800_s23 + $0x150] sm:$0xff] %vm1371_vm0, %v1269_v46 }
  0xe3   : > { %v735_v51 = vpop.permute.xlu1 %734  ;;  %v730_v52 = vpop.permute.xlu0 %729 }
  0xe4   : > { %v1272_v53 = vmul.f32 %v735_v51, %v264_v47  ;;  %v1271_v54 = vmul.f32 %v730_v52, %v263_v48  ;;  %1044 = vperm.xlu1 %1657, %v470_v49   ;;  %1039 = vperm.xlu0 %1656, %v469_v50   ;;  %v280_v47 = vld [vmem:[%s1790_s20 + $0x1e8] sm:$0xff]  ;;  %v279_v48 = vld [vmem:[%s1790_s20 + $0x1e0] sm:$0xff]  ;;  %v486_v49 = vld [vmem:[%s1722_s17 + $0x3d8] sm:$0xff] }
  0xe5   : > { %v485_v50 = vld [vmem:[%s1722_s17 + $0x3d0] sm:$0xff] }
  0xe6   : > { %1417 = vst.msk [vmem:[%s1800_s23 + $0x168] sm:$0xff] %vm1371_vm0, %v1272_v53  ;;  %1416 = vst.msk [vmem:[%s1800_s23 + $0x160] sm:$0xff] %vm1371_vm0, %v1271_v54 }
  0xe7   : > { %v745_v59 = vpop.permute.xlu1 %744  ;;  %v740_v60 = vpop.permute.xlu0 %739 }
  0xe8   : > { %v1274_v61 = vmul.f32 %v745_v59, %v266_v55  ;;  %v1273_v62 = vmul.f32 %v740_v60, %v265_v56  ;;  %1054 = vperm.xlu1 %1657, %v472_v57   ;;  %1049 = vperm.xlu0 %1656, %v471_v58   ;;  %v282_v55 = vld [vmem:[%s1790_s20 + $0x1f8] sm:$0xff]  ;;  %v281_v56 = vld [vmem:[%s1790_s20 + $0x1f0] sm:$0xff]  ;;  %v488_v57 = vld [vmem:[%s1722_s17 + $0x3e8] sm:$0xff] }
  0xe9   : > { %v487_v58 = vld [vmem:[%s1722_s17 + $0x3e0] sm:$0xff] }
  0xea   : > { %1419 = vst.msk [vmem:[%s1800_s23 + $0x178] sm:$0xff] %vm1371_vm0, %v1274_v61  ;;  %1418 = vst.msk [vmem:[%s1800_s23 + $0x170] sm:$0xff] %vm1371_vm0, %v1273_v62 }
  0xeb   : > { %v755_v3 = vpop.permute.xlu1 %754  ;;  %v750_v4 = vpop.permute.xlu0 %749 }
  0xec   : > { %v1276_v5 = vmul.f32 %v755_v3, %v268_v63  ;;  %v1275_v6 = vmul.f32 %v750_v4, %v267_v0  ;;  %1064 = vperm.xlu1 %1657, %v474_v1   ;;  %1059 = vperm.xlu0 %1656, %v473_v2   ;;  %v284_v63 = vld [vmem:[%s1790_s20 + $0x208] sm:$0xff]  ;;  %v283_v0 = vld [vmem:[%s1790_s20 + $0x200] sm:$0xff]  ;;  %v490_v1 = vld [vmem:[%s1722_s17 + $0x3f8] sm:$0xff] }
  0xed   : > { %v489_v2 = vld [vmem:[%s1722_s17 + $0x3f0] sm:$0xff] }
  0xee   : > { %1421 = vst.msk [vmem:[%s1800_s23 + $0x188] sm:$0xff] %vm1371_vm0, %v1276_v5  ;;  %1420 = vst.msk [vmem:[%s1800_s23 + $0x180] sm:$0xff] %vm1371_vm0, %v1275_v6 }
  0xef   : > { %v765_v11 = vpop.permute.xlu1 %764  ;;  %v760_v12 = vpop.permute.xlu0 %759 }
  0xf0   : > { %v1278_v13 = vmul.f32 %v765_v11, %v270_v7  ;;  %v1277_v14 = vmul.f32 %v760_v12, %v269_v8  ;;  %1074 = vperm.xlu1 %1657, %v476_v9   ;;  %1069 = vperm.xlu0 %1656, %v475_v10   ;;  %v286_v7 = vld [vmem:[%s1790_s20 + $0x218] sm:$0xff]  ;;  %v285_v8 = vld [vmem:[%s1790_s20 + $0x210] sm:$0xff]  ;;  %v492_v9 = vld [vmem:[%s1722_s17 + $0x408] sm:$0xff] }
  0xf1   : > { %v491_v10 = vld [vmem:[%s1722_s17 + $0x400] sm:$0xff] }
  0xf2   : > { %1423 = vst.msk [vmem:[%s1800_s23 + $0x198] sm:$0xff] %vm1371_vm0, %v1278_v13  ;;  %1422 = vst.msk [vmem:[%s1800_s23 + $0x190] sm:$0xff] %vm1371_vm0, %v1277_v14 }
  0xf3   : > { %v775_v19 = vpop.permute.xlu1 %774  ;;  %v770_v20 = vpop.permute.xlu0 %769 }
  0xf4   : > { %v1280_v21 = vmul.f32 %v775_v19, %v272_v15  ;;  %v1279_v22 = vmul.f32 %v770_v20, %v271_v16  ;;  %1084 = vperm.xlu1 %1657, %v478_v17   ;;  %1079 = vperm.xlu0 %1656, %v477_v18   ;;  %v288_v15 = vld [vmem:[%s1790_s20 + $0x228] sm:$0xff]  ;;  %v287_v16 = vld [vmem:[%s1790_s20 + $0x220] sm:$0xff]  ;;  %v494_v17 = vld [vmem:[%s1722_s17 + $0x418] sm:$0xff] }
  0xf5   : > { %v493_v18 = vld [vmem:[%s1722_s17 + $0x410] sm:$0xff] }
  0xf6   : > { %1425 = vst.msk [vmem:[%s1800_s23 + $0x1a8] sm:$0xff] %vm1371_vm0, %v1280_v21  ;;  %1424 = vst.msk [vmem:[%s1800_s23 + $0x1a0] sm:$0xff] %vm1371_vm0, %v1279_v22 }
  0xf7   : > { %v785_v27 = vpop.permute.xlu1 %784  ;;  %v780_v28 = vpop.permute.xlu0 %779 }
  0xf8   : > { %v1282_v29 = vmul.f32 %v785_v27, %v274_v23  ;;  %v1281_v30 = vmul.f32 %v780_v28, %v273_v24  ;;  %1094 = vperm.xlu1 %1657, %v480_v25   ;;  %1089 = vperm.xlu0 %1656, %v479_v26   ;;  %v290_v23 = vld [vmem:[%s1790_s20 + $0x238] sm:$0xff]  ;;  %v289_v24 = vld [vmem:[%s1790_s20 + $0x230] sm:$0xff]  ;;  %v496_v25 = vld [vmem:[%s1722_s17 + $0x428] sm:$0xff] }
  0xf9   : > { %v495_v26 = vld [vmem:[%s1722_s17 + $0x420] sm:$0xff] }
  0xfa   : > { %1427 = vst.msk [vmem:[%s1800_s23 + $0x1b8] sm:$0xff] %vm1371_vm0, %v1282_v29  ;;  %1426 = vst.msk [vmem:[%s1800_s23 + $0x1b0] sm:$0xff] %vm1371_vm0, %v1281_v30 }
  0xfb   : > { %v795_v35 = vpop.permute.xlu1 %794  ;;  %v790_v36 = vpop.permute.xlu0 %789 }
  0xfc   : > { %v1284_v37 = vmul.f32 %v795_v35, %v276_v31  ;;  %v1283_v38 = vmul.f32 %v790_v36, %v275_v32  ;;  %1104 = vperm.xlu1 %1657, %v482_v33   ;;  %1099 = vperm.xlu0 %1656, %v481_v34   ;;  %v292_v31 = vld [vmem:[%s1790_s20 + $0x248] sm:$0xff]  ;;  %v291_v32 = vld [vmem:[%s1790_s20 + $0x240] sm:$0xff]  ;;  %v498_v33 = vld [vmem:[%s1722_s17 + $0x438] sm:$0xff] }
  0xfd   : > { %v497_v34 = vld [vmem:[%s1722_s17 + $0x430] sm:$0xff] }
  0xfe   : > { %1429 = vst.msk [vmem:[%s1800_s23 + $0x1c8] sm:$0xff] %vm1371_vm0, %v1284_v37  ;;  %1428 = vst.msk [vmem:[%s1800_s23 + $0x1c0] sm:$0xff] %vm1371_vm0, %v1283_v38 }
  0xff   : > { %v805_v43 = vpop.permute.xlu1 %804  ;;  %v800_v44 = vpop.permute.xlu0 %799 }
 0x100   : > { %v1286_v45 = vmul.f32 %v805_v43, %v278_v39  ;;  %v1285_v46 = vmul.f32 %v800_v44, %v277_v40  ;;  %1114 = vperm.xlu1 %1657, %v484_v41   ;;  %1109 = vperm.xlu0 %1656, %v483_v42   ;;  %v294_v39 = vld [vmem:[%s1790_s20 + $0x258] sm:$0xff]  ;;  %v293_v40 = vld [vmem:[%s1790_s20 + $0x250] sm:$0xff]  ;;  %v500_v41 = vld [vmem:[%s1722_s17 + $0x448] sm:$0xff] }
 0x101   : > { %v499_v42 = vld [vmem:[%s1722_s17 + $0x440] sm:$0xff] }
 0x102   : > { %1431 = vst.msk [vmem:[%s1800_s23 + $0x1d8] sm:$0xff] %vm1371_vm0, %v1286_v45  ;;  %1430 = vst.msk [vmem:[%s1800_s23 + $0x1d0] sm:$0xff] %vm1371_vm0, %v1285_v46 }
 0x103   : > { %v815_v51 = vpop.permute.xlu1 %814  ;;  %v810_v52 = vpop.permute.xlu0 %809 }
 0x104   : > { %v1288_v53 = vmul.f32 %v815_v51, %v280_v47  ;;  %v1287_v54 = vmul.f32 %v810_v52, %v279_v48  ;;  %1124 = vperm.xlu1 %1657, %v486_v49   ;;  %1119 = vperm.xlu0 %1656, %v485_v50   ;;  %v296_v47 = vld [vmem:[%s1790_s20 + $0x268] sm:$0xff]  ;;  %v295_v48 = vld [vmem:[%s1790_s20 + $0x260] sm:$0xff]  ;;  %v502_v49 = vld [vmem:[%s1722_s17 + $0x458] sm:$0xff] }
 0x105   : > { %v501_v50 = vld [vmem:[%s1722_s17 + $0x450] sm:$0xff] }
 0x106   : > { %1433 = vst.msk [vmem:[%s1800_s23 + $0x1e8] sm:$0xff] %vm1371_vm0, %v1288_v53  ;;  %1432 = vst.msk [vmem:[%s1800_s23 + $0x1e0] sm:$0xff] %vm1371_vm0, %v1287_v54 }
 0x107   : > { %v825_v59 = vpop.permute.xlu1 %824  ;;  %v820_v60 = vpop.permute.xlu0 %819 }
 0x108   : > { %v1290_v61 = vmul.f32 %v825_v59, %v282_v55  ;;  %v1289_v62 = vmul.f32 %v820_v60, %v281_v56  ;;  %1134 = vperm.xlu1 %1657, %v488_v57   ;;  %1129 = vperm.xlu0 %1656, %v487_v58   ;;  %v298_v55 = vld [vmem:[%s1790_s20 + $0x278] sm:$0xff]  ;;  %v297_v56 = vld [vmem:[%s1790_s20 + $0x270] sm:$0xff]  ;;  %v504_v57 = vld [vmem:[%s1722_s17 + $0x468] sm:$0xff] }
 0x109   : > { %v503_v58 = vld [vmem:[%s1722_s17 + $0x460] sm:$0xff] }
 0x10a   : > { %1435 = vst.msk [vmem:[%s1800_s23 + $0x1f8] sm:$0xff] %vm1371_vm0, %v1290_v61  ;;  %1434 = vst.msk [vmem:[%s1800_s23 + $0x1f0] sm:$0xff] %vm1371_vm0, %v1289_v62 }
 0x10b   : > { %v835_v3 = vpop.permute.xlu1 %834  ;;  %v830_v4 = vpop.permute.xlu0 %829 }
 0x10c   : > { %v1292_v5 = vmul.f32 %v835_v3, %v284_v63  ;;  %v1291_v6 = vmul.f32 %v830_v4, %v283_v0  ;;  %1144 = vperm.xlu1 %1657, %v490_v1   ;;  %1139 = vperm.xlu0 %1656, %v489_v2   ;;  %v300_v63 = vld [vmem:[%s1790_s20 + $0x288] sm:$0xff]  ;;  %v299_v0 = vld [vmem:[%s1790_s20 + $0x280] sm:$0xff]  ;;  %v506_v1 = vld [vmem:[%s1722_s17 + $0x478] sm:$0xff] }
 0x10d   : > { %v505_v2 = vld [vmem:[%s1722_s17 + $0x470] sm:$0xff] }
 0x10e   : > { %1437 = vst.msk [vmem:[%s1800_s23 + $0x208] sm:$0xff] %vm1371_vm0, %v1292_v5  ;;  %1436 = vst.msk [vmem:[%s1800_s23 + $0x200] sm:$0xff] %vm1371_vm0, %v1291_v6 }
 0x10f   : > { %v845_v11 = vpop.permute.xlu1 %844  ;;  %v840_v12 = vpop.permute.xlu0 %839 }
 0x110   : > { %v1294_v13 = vmul.f32 %v845_v11, %v286_v7  ;;  %v1293_v14 = vmul.f32 %v840_v12, %v285_v8  ;;  %1154 = vperm.xlu1 %1657, %v492_v9   ;;  %1149 = vperm.xlu0 %1656, %v491_v10   ;;  %v302_v7 = vld [vmem:[%s1790_s20 + $0x298] sm:$0xff]  ;;  %v301_v8 = vld [vmem:[%s1790_s20 + $0x290] sm:$0xff] }
 0x112   : > { %1439 = vst.msk [vmem:[%s1800_s23 + $0x218] sm:$0xff] %vm1371_vm0, %v1294_v13  ;;  %1438 = vst.msk [vmem:[%s1800_s23 + $0x210] sm:$0xff] %vm1371_vm0, %v1293_v14  ;;  %v304_v13 = vld [vmem:[%s1790_s20 + $0x2a8] sm:$0xff]  ;;  %v303_v14 = vld [vmem:[%s1790_s20 + $0x2a0] sm:$0xff] }
 0x113   : > { %v855_v19 = vpop.permute.xlu1 %854  ;;  %v850_v20 = vpop.permute.xlu0 %849 }
 0x114   : > { %v1296_v21 = vmul.f32 %v855_v19, %v288_v15  ;;  %v1295_v22 = vmul.f32 %v850_v20, %v287_v16  ;;  %1164 = vperm.xlu1 %1657, %v494_v17   ;;  %1159 = vperm.xlu0 %1656, %v493_v18   ;;  %v306_v19 = vld [vmem:[%s1790_s20 + $0x2b8] sm:$0xff]  ;;  %v305_v20 = vld [vmem:[%s1790_s20 + $0x2b0] sm:$0xff] }
 0x116   : > { %1441 = vst.msk [vmem:[%s1800_s23 + $0x228] sm:$0xff] %vm1371_vm0, %v1296_v21  ;;  %1440 = vst.msk [vmem:[%s1800_s23 + $0x220] sm:$0xff] %vm1371_vm0, %v1295_v22 }
 0x117   : > { %v865_v27 = vpop.permute.xlu1 %864  ;;  %v860_v28 = vpop.permute.xlu0 %859 }
 0x118   : > { %v1298_v29 = vmul.f32 %v865_v27, %v290_v23  ;;  %v1297_v30 = vmul.f32 %v860_v28, %v289_v24  ;;  %1174 = vperm.xlu1 %1657, %v496_v25   ;;  %1169 = vperm.xlu0 %1656, %v495_v26   ;;  %v308_v25 = vld [vmem:[%s1790_s20 + $0x2c8] sm:$0xff]  ;;  %v307_v26 = vld [vmem:[%s1790_s20 + $0x2c0] sm:$0xff] }
 0x11a   : > { %1443 = vst.msk [vmem:[%s1800_s23 + $0x238] sm:$0xff] %vm1371_vm0, %v1298_v29  ;;  %1442 = vst.msk [vmem:[%s1800_s23 + $0x230] sm:$0xff] %vm1371_vm0, %v1297_v30 }
 0x11b   : > { %v875_v35 = vpop.permute.xlu1 %874  ;;  %v870_v36 = vpop.permute.xlu0 %869 }
 0x11c   : > { %v1300_v37 = vmul.f32 %v875_v35, %v292_v31  ;;  %v1299_v38 = vmul.f32 %v870_v36, %v291_v32  ;;  %1184 = vperm.xlu1 %1657, %v498_v33   ;;  %1179 = vperm.xlu0 %1656, %v497_v34   ;;  %v310_v31 = vld [vmem:[%s1790_s20 + $0x2d8] sm:$0xff]  ;;  %v309_v32 = vld [vmem:[%s1790_s20 + $0x2d0] sm:$0xff] }
 0x11e   : > { %1445 = vst.msk [vmem:[%s1800_s23 + $0x248] sm:$0xff] %vm1371_vm0, %v1300_v37  ;;  %1444 = vst.msk [vmem:[%s1800_s23 + $0x240] sm:$0xff] %vm1371_vm0, %v1299_v38  ;;  %v312_v37 = vld [vmem:[%s1790_s20 + $0x2e8] sm:$0xff]  ;;  %v311_v38 = vld [vmem:[%s1790_s20 + $0x2e0] sm:$0xff] }
 0x11f   : > { %v885_v43 = vpop.permute.xlu1 %884  ;;  %v880_v44 = vpop.permute.xlu0 %879 }
 0x120   : > { %v1302_v45 = vmul.f32 %v885_v43, %v294_v39  ;;  %v1301_v46 = vmul.f32 %v880_v44, %v293_v40  ;;  %1194 = vperm.xlu1 %1657, %v500_v41   ;;  %1189 = vperm.xlu0 %1656, %v499_v42   ;;  %v314_v43 = vld [vmem:[%s1790_s20 + $0x2f8] sm:$0xff]  ;;  %v313_v44 = vld [vmem:[%s1790_s20 + $0x2f0] sm:$0xff] }
 0x122   : > { %1447 = vst.msk [vmem:[%s1800_s23 + $0x258] sm:$0xff] %vm1371_vm0, %v1302_v45  ;;  %1446 = vst.msk [vmem:[%s1800_s23 + $0x250] sm:$0xff] %vm1371_vm0, %v1301_v46 }
 0x123   : > { %v895_v51 = vpop.permute.xlu1 %894  ;;  %v890_v52 = vpop.permute.xlu0 %889 }
 0x124   : > { %v1304_v53 = vmul.f32 %v895_v51, %v296_v47  ;;  %v1303_v54 = vmul.f32 %v890_v52, %v295_v48  ;;  %1204 = vperm.xlu1 %1657, %v502_v49   ;;  %1199 = vperm.xlu0 %1656, %v501_v50   ;;  %v316_v49 = vld [vmem:[%s1790_s20 + $0x308] sm:$0xff]  ;;  %v315_v50 = vld [vmem:[%s1790_s20 + $0x300] sm:$0xff] }
 0x126   : > { %1449 = vst.msk [vmem:[%s1800_s23 + $0x268] sm:$0xff] %vm1371_vm0, %v1304_v53  ;;  %1448 = vst.msk [vmem:[%s1800_s23 + $0x260] sm:$0xff] %vm1371_vm0, %v1303_v54 }
 0x127   : > { %v905_v59 = vpop.permute.xlu1 %904  ;;  %v900_v60 = vpop.permute.xlu0 %899 }
 0x128   : > { %v1306_v61 = vmul.f32 %v905_v59, %v298_v55  ;;  %v1305_v62 = vmul.f32 %v900_v60, %v297_v56  ;;  %1214 = vperm.xlu1 %1657, %v504_v57   ;;  %1209 = vperm.xlu0 %1656, %v503_v58   ;;  %v318_v55 = vld [vmem:[%s1790_s20 + $0x318] sm:$0xff]  ;;  %v317_v56 = vld [vmem:[%s1790_s20 + $0x310] sm:$0xff] }
 0x12a   : > { %1451 = vst.msk [vmem:[%s1800_s23 + $0x278] sm:$0xff] %vm1371_vm0, %v1306_v61  ;;  %1450 = vst.msk [vmem:[%s1800_s23 + $0x270] sm:$0xff] %vm1371_vm0, %v1305_v62  ;;  %v320_v61 = vld [vmem:[%s1790_s20 + $0x328] sm:$0xff]  ;;  %v319_v62 = vld [vmem:[%s1790_s20 + $0x320] sm:$0xff] }
 0x12b   : > { %v915_v3 = vpop.permute.xlu1 %914  ;;  %v910_v4 = vpop.permute.xlu0 %909 }
 0x12c   : > { %v1308_v5 = vmul.f32 %v915_v3, %v300_v63  ;;  %v1307_v6 = vmul.f32 %v910_v4, %v299_v0  ;;  %1224 = vperm.xlu1 %1657, %v506_v1   ;;  %1219 = vperm.xlu0 %1656, %v505_v2   ;;  %v322_v3 = vld [vmem:[%s1790_s20 + $0x338] sm:$0xff]  ;;  %v321_v4 = vld [vmem:[%s1790_s20 + $0x330] sm:$0xff] }
 0x12e   : > { %1453 = vst.msk [vmem:[%s1800_s23 + $0x288] sm:$0xff] %vm1371_vm0, %v1308_v5  ;;  %1452 = vst.msk [vmem:[%s1800_s23 + $0x280] sm:$0xff] %vm1371_vm0, %v1307_v6 }
 0x12f   : > { %v925_v9 = vpop.permute.xlu1 %924  ;;  %v920_v10 = vpop.permute.xlu0 %919 }
 0x130   : > { %v1310_v11 = vmul.f32 %v925_v9, %v302_v7  ;;  %v1309_v12 = vmul.f32 %v920_v10, %v301_v8  ;;  %v324_v9 = vld [vmem:[%s1790_s20 + $0x348] sm:$0xff]  ;;  %v323_v10 = vld [vmem:[%s1790_s20 + $0x340] sm:$0xff] }
 0x132   : > { %1455 = vst.msk [vmem:[%s1800_s23 + $0x298] sm:$0xff] %vm1371_vm0, %v1310_v11  ;;  %1454 = vst.msk [vmem:[%s1800_s23 + $0x290] sm:$0xff] %vm1371_vm0, %v1309_v12 }
 0x133   : > { %v935_v15 = vpop.permute.xlu1 %934  ;;  %v930_v16 = vpop.permute.xlu0 %929 }
 0x134   : > { %v1312_v17 = vmul.f32 %v935_v15, %v304_v13  ;;  %v1311_v18 = vmul.f32 %v930_v16, %v303_v14  ;;  %v326_v15 = vld [vmem:[%s1790_s20 + $0x358] sm:$0xff]  ;;  %v325_v16 = vld [vmem:[%s1790_s20 + $0x350] sm:$0xff] }
 0x136   : > { %1457 = vst.msk [vmem:[%s1800_s23 + $0x2a8] sm:$0xff] %vm1371_vm0, %v1312_v17  ;;  %1456 = vst.msk [vmem:[%s1800_s23 + $0x2a0] sm:$0xff] %vm1371_vm0, %v1311_v18 }
 0x137   : > { %v945_v21 = vpop.permute.xlu1 %944  ;;  %v940_v22 = vpop.permute.xlu0 %939 }
 0x138   : > { %v1314_v23 = vmul.f32 %v945_v21, %v306_v19  ;;  %v1313_v24 = vmul.f32 %v940_v22, %v305_v20  ;;  %v328_v21 = vld [vmem:[%s1790_s20 + $0x368] sm:$0xff]  ;;  %v327_v22 = vld [vmem:[%s1790_s20 + $0x360] sm:$0xff] }
 0x13a   : > { %1459 = vst.msk [vmem:[%s1800_s23 + $0x2b8] sm:$0xff] %vm1371_vm0, %v1314_v23  ;;  %1458 = vst.msk [vmem:[%s1800_s23 + $0x2b0] sm:$0xff] %vm1371_vm0, %v1313_v24 }
 0x13b   : > { %v955_v27 = vpop.permute.xlu1 %954  ;;  %v950_v28 = vpop.permute.xlu0 %949 }
 0x13c   : > { %v1316_v29 = vmul.f32 %v955_v27, %v308_v25  ;;  %v1315_v30 = vmul.f32 %v950_v28, %v307_v26  ;;  %v330_v27 = vld [vmem:[%s1790_s20 + $0x378] sm:$0xff]  ;;  %v329_v28 = vld [vmem:[%s1790_s20 + $0x370] sm:$0xff] }
 0x13e   : > { %1461 = vst.msk [vmem:[%s1800_s23 + $0x2c8] sm:$0xff] %vm1371_vm0, %v1316_v29  ;;  %1460 = vst.msk [vmem:[%s1800_s23 + $0x2c0] sm:$0xff] %vm1371_vm0, %v1315_v30 }
 0x13f   : > { %v965_v33 = vpop.permute.xlu1 %964  ;;  %v960_v34 = vpop.permute.xlu0 %959 }
 0x140   : > { %v1318_v35 = vmul.f32 %v965_v33, %v310_v31  ;;  %v1317_v36 = vmul.f32 %v960_v34, %v309_v32  ;;  %v332_v33 = vld [vmem:[%s1790_s20 + $0x388] sm:$0xff]  ;;  %v331_v34 = vld [vmem:[%s1790_s20 + $0x380] sm:$0xff] }
 0x142   : > { %1463 = vst.msk [vmem:[%s1800_s23 + $0x2d8] sm:$0xff] %vm1371_vm0, %v1318_v35  ;;  %1462 = vst.msk [vmem:[%s1800_s23 + $0x2d0] sm:$0xff] %vm1371_vm0, %v1317_v36 }
 0x143   : > { %v975_v39 = vpop.permute.xlu1 %974  ;;  %v970_v40 = vpop.permute.xlu0 %969 }
 0x144   : > { %v1320_v41 = vmul.f32 %v975_v39, %v312_v37  ;;  %v1319_v42 = vmul.f32 %v970_v40, %v311_v38  ;;  %v334_v39 = vld [vmem:[%s1790_s20 + $0x398] sm:$0xff]  ;;  %v333_v40 = vld [vmem:[%s1790_s20 + $0x390] sm:$0xff] }
 0x146   : > { %1465 = vst.msk [vmem:[%s1800_s23 + $0x2e8] sm:$0xff] %vm1371_vm0, %v1320_v41  ;;  %1464 = vst.msk [vmem:[%s1800_s23 + $0x2e0] sm:$0xff] %vm1371_vm0, %v1319_v42 }
 0x147   : > { %v985_v45 = vpop.permute.xlu1 %984  ;;  %v980_v46 = vpop.permute.xlu0 %979 }
 0x148   : > { %v1322_v47 = vmul.f32 %v985_v45, %v314_v43  ;;  %v1321_v48 = vmul.f32 %v980_v46, %v313_v44  ;;  %v336_v45 = vld [vmem:[%s1790_s20 + $0x3a8] sm:$0xff]  ;;  %v335_v46 = vld [vmem:[%s1790_s20 + $0x3a0] sm:$0xff] }
 0x14a   : > { %1467 = vst.msk [vmem:[%s1800_s23 + $0x2f8] sm:$0xff] %vm1371_vm0, %v1322_v47  ;;  %1466 = vst.msk [vmem:[%s1800_s23 + $0x2f0] sm:$0xff] %vm1371_vm0, %v1321_v48 }
 0x14b   : > { %v995_v51 = vpop.permute.xlu1 %994  ;;  %v990_v52 = vpop.permute.xlu0 %989 }
 0x14c   : > { %v1324_v53 = vmul.f32 %v995_v51, %v316_v49  ;;  %v1323_v54 = vmul.f32 %v990_v52, %v315_v50  ;;  %v338_v51 = vld [vmem:[%s1790_s20 + $0x3b8] sm:$0xff]  ;;  %v337_v52 = vld [vmem:[%s1790_s20 + $0x3b0] sm:$0xff] }
 0x14e   : > { %1469 = vst.msk [vmem:[%s1800_s23 + $0x308] sm:$0xff] %vm1371_vm0, %v1324_v53  ;;  %1468 = vst.msk [vmem:[%s1800_s23 + $0x300] sm:$0xff] %vm1371_vm0, %v1323_v54 }
 0x14f   : > { %v1005_v57 = vpop.permute.xlu1 %1004  ;;  %v1000_v58 = vpop.permute.xlu0 %999 }
 0x150   : > { %v1326_v59 = vmul.f32 %v1005_v57, %v318_v55  ;;  %v1325_v60 = vmul.f32 %v1000_v58, %v317_v56  ;;  %v340_v57 = vld [vmem:[%s1790_s20 + $0x3c8] sm:$0xff]  ;;  %v339_v58 = vld [vmem:[%s1790_s20 + $0x3c0] sm:$0xff] }
 0x152   : > { %1471 = vst.msk [vmem:[%s1800_s23 + $0x318] sm:$0xff] %vm1371_vm0, %v1326_v59  ;;  %1470 = vst.msk [vmem:[%s1800_s23 + $0x310] sm:$0xff] %vm1371_vm0, %v1325_v60 }
 0x153   : > { %v1015_v63 = vpop.permute.xlu1 %1014  ;;  %v1010_v0 = vpop.permute.xlu0 %1009 }
 0x154   : > { %v1328_v1 = vmul.f32 %v1015_v63, %v320_v61  ;;  %v1327_v2 = vmul.f32 %v1010_v0, %v319_v62  ;;  %v342_v63 = vld [vmem:[%s1790_s20 + $0x3d8] sm:$0xff]  ;;  %v341_v0 = vld [vmem:[%s1790_s20 + $0x3d0] sm:$0xff] }
 0x156   : > { %1473 = vst.msk [vmem:[%s1800_s23 + $0x328] sm:$0xff] %vm1371_vm0, %v1328_v1  ;;  %1472 = vst.msk [vmem:[%s1800_s23 + $0x320] sm:$0xff] %vm1371_vm0, %v1327_v2 }
 0x157   : > { %v1025_v5 = vpop.permute.xlu1 %1024  ;;  %v1020_v6 = vpop.permute.xlu0 %1019 }
 0x158   : > { %v1330_v7 = vmul.f32 %v1025_v5, %v322_v3  ;;  %v1329_v8 = vmul.f32 %v1020_v6, %v321_v4  ;;  %v344_v5 = vld [vmem:[%s1790_s20 + $0x3e8] sm:$0xff]  ;;  %v343_v6 = vld [vmem:[%s1790_s20 + $0x3e0] sm:$0xff] }
 0x15a   : > { %1475 = vst.msk [vmem:[%s1800_s23 + $0x338] sm:$0xff] %vm1371_vm0, %v1330_v7  ;;  %1474 = vst.msk [vmem:[%s1800_s23 + $0x330] sm:$0xff] %vm1371_vm0, %v1329_v8 }
 0x15b   : > { %v1035_v11 = vpop.permute.xlu1 %1034  ;;  %v1030_v12 = vpop.permute.xlu0 %1029 }
 0x15c   : > { %v1332_v13 = vmul.f32 %v1035_v11, %v324_v9  ;;  %v1331_v14 = vmul.f32 %v1030_v12, %v323_v10  ;;  %v346_v11 = vld [vmem:[%s1790_s20 + $0x3f8] sm:$0xff]  ;;  %v345_v12 = vld [vmem:[%s1790_s20 + $0x3f0] sm:$0xff] }
 0x15e   : > { %1477 = vst.msk [vmem:[%s1800_s23 + $0x348] sm:$0xff] %vm1371_vm0, %v1332_v13  ;;  %1476 = vst.msk [vmem:[%s1800_s23 + $0x340] sm:$0xff] %vm1371_vm0, %v1331_v14 }
 0x15f   : > { %v1045_v17 = vpop.permute.xlu1 %1044  ;;  %v1040_v18 = vpop.permute.xlu0 %1039 }
 0x160   : > { %v1334_v19 = vmul.f32 %v1045_v17, %v326_v15  ;;  %v1333_v20 = vmul.f32 %v1040_v18, %v325_v16  ;;  %v348_v17 = vld [vmem:[%s1790_s20 + $0x408] sm:$0xff]  ;;  %v347_v18 = vld [vmem:[%s1790_s20 + $0x400] sm:$0xff] }
 0x162   : > { %1479 = vst.msk [vmem:[%s1800_s23 + $0x358] sm:$0xff] %vm1371_vm0, %v1334_v19  ;;  %1478 = vst.msk [vmem:[%s1800_s23 + $0x350] sm:$0xff] %vm1371_vm0, %v1333_v20 }
 0x163   : > { %v1055_v23 = vpop.permute.xlu1 %1054  ;;  %v1050_v24 = vpop.permute.xlu0 %1049 }
 0x164   : > { %v1336_v25 = vmul.f32 %v1055_v23, %v328_v21  ;;  %v1335_v26 = vmul.f32 %v1050_v24, %v327_v22  ;;  %v350_v23 = vld [vmem:[%s1790_s20 + $0x418] sm:$0xff]  ;;  %v349_v24 = vld [vmem:[%s1790_s20 + $0x410] sm:$0xff] }
 0x166   : > { %1481 = vst.msk [vmem:[%s1800_s23 + $0x368] sm:$0xff] %vm1371_vm0, %v1336_v25  ;;  %1480 = vst.msk [vmem:[%s1800_s23 + $0x360] sm:$0xff] %vm1371_vm0, %v1335_v26 }
 0x167   : > { %v1065_v29 = vpop.permute.xlu1 %1064  ;;  %v1060_v30 = vpop.permute.xlu0 %1059 }
 0x168   : > { %v1338_v31 = vmul.f32 %v1065_v29, %v330_v27  ;;  %v1337_v32 = vmul.f32 %v1060_v30, %v329_v28  ;;  %v352_v29 = vld [vmem:[%s1790_s20 + $0x428] sm:$0xff]  ;;  %v351_v30 = vld [vmem:[%s1790_s20 + $0x420] sm:$0xff] }
 0x16a   : > { %1483 = vst.msk [vmem:[%s1800_s23 + $0x378] sm:$0xff] %vm1371_vm0, %v1338_v31  ;;  %1482 = vst.msk [vmem:[%s1800_s23 + $0x370] sm:$0xff] %vm1371_vm0, %v1337_v32 }
 0x16b   : > { %v1075_v35 = vpop.permute.xlu1 %1074  ;;  %v1070_v36 = vpop.permute.xlu0 %1069 }
 0x16c   : > { %v1340_v37 = vmul.f32 %v1075_v35, %v332_v33  ;;  %v1339_v38 = vmul.f32 %v1070_v36, %v331_v34  ;;  %v354_v35 = vld [vmem:[%s1790_s20 + $0x438] sm:$0xff]  ;;  %v353_v36 = vld [vmem:[%s1790_s20 + $0x430] sm:$0xff] }
 0x16e   : > { %1485 = vst.msk [vmem:[%s1800_s23 + $0x388] sm:$0xff] %vm1371_vm0, %v1340_v37  ;;  %1484 = vst.msk [vmem:[%s1800_s23 + $0x380] sm:$0xff] %vm1371_vm0, %v1339_v38 }
 0x16f   : > { %v1085_v41 = vpop.permute.xlu1 %1084  ;;  %v1080_v42 = vpop.permute.xlu0 %1079 }
 0x170   : > { %v1342_v43 = vmul.f32 %v1085_v41, %v334_v39  ;;  %v1341_v44 = vmul.f32 %v1080_v42, %v333_v40  ;;  %v356_v41 = vld [vmem:[%s1790_s20 + $0x448] sm:$0xff]  ;;  %v355_v42 = vld [vmem:[%s1790_s20 + $0x440] sm:$0xff] }
 0x172   : > { %1487 = vst.msk [vmem:[%s1800_s23 + $0x398] sm:$0xff] %vm1371_vm0, %v1342_v43  ;;  %1486 = vst.msk [vmem:[%s1800_s23 + $0x390] sm:$0xff] %vm1371_vm0, %v1341_v44 }
 0x173   : > { %v1095_v47 = vpop.permute.xlu1 %1094  ;;  %v1090_v48 = vpop.permute.xlu0 %1089 }
 0x174   : > { %v1344_v49 = vmul.f32 %v1095_v47, %v336_v45  ;;  %v1343_v50 = vmul.f32 %v1090_v48, %v335_v46  ;;  %v358_v47 = vld [vmem:[%s1790_s20 + $0x458] sm:$0xff]  ;;  %v357_v48 = vld [vmem:[%s1790_s20 + $0x450] sm:$0xff] }
 0x176   : > { %1489 = vst.msk [vmem:[%s1800_s23 + $0x3a8] sm:$0xff] %vm1371_vm0, %v1344_v49  ;;  %1488 = vst.msk [vmem:[%s1800_s23 + $0x3a0] sm:$0xff] %vm1371_vm0, %v1343_v50 }
 0x177   : > { %v1105_v53 = vpop.permute.xlu1 %1104  ;;  %v1100_v54 = vpop.permute.xlu0 %1099 }
 0x178   : > { %v1346_v55 = vmul.f32 %v1105_v53, %v338_v51  ;;  %v1345_v56 = vmul.f32 %v1100_v54, %v337_v52  ;;  %v360_v53 = vld [vmem:[%s1790_s20 + $0x468] sm:$0xff]  ;;  %v359_v54 = vld [vmem:[%s1790_s20 + $0x460] sm:$0xff] }
 0x17a   : > { %1491 = vst.msk [vmem:[%s1800_s23 + $0x3b8] sm:$0xff] %vm1371_vm0, %v1346_v55  ;;  %1490 = vst.msk [vmem:[%s1800_s23 + $0x3b0] sm:$0xff] %vm1371_vm0, %v1345_v56 }
 0x17b   : > { %v1115_v59 = vpop.permute.xlu1 %1114  ;;  %v1110_v60 = vpop.permute.xlu0 %1109 }
 0x17c   : > { %v1348_v61 = vmul.f32 %v1115_v59, %v340_v57  ;;  %v1347_v62 = vmul.f32 %v1110_v60, %v339_v58  ;;  %v362_v59 = vld [vmem:[%s1790_s20 + $0x478] sm:$0xff]  ;;  %v361_v60 = vld [vmem:[%s1790_s20 + $0x470] sm:$0xff] }
 0x17e   : > { %1493 = vst.msk [vmem:[%s1800_s23 + $0x3c8] sm:$0xff] %vm1371_vm0, %v1348_v61  ;;  %1492 = vst.msk [vmem:[%s1800_s23 + $0x3c0] sm:$0xff] %vm1371_vm0, %v1347_v62 }
 0x17f   : > { %v1125_v1 = vpop.permute.xlu1 %1124  ;;  %v1120_v2 = vpop.permute.xlu0 %1119 }
 0x180   : > { %v1350_v3 = vmul.f32 %v1125_v1, %v342_v63  ;;  %v1349_v4 = vmul.f32 %v1120_v2, %v341_v0 }
 0x182   : > { %1495 = vst.msk [vmem:[%s1800_s23 + $0x3d8] sm:$0xff] %vm1371_vm0, %v1350_v3  ;;  %1494 = vst.msk [vmem:[%s1800_s23 + $0x3d0] sm:$0xff] %vm1371_vm0, %v1349_v4 }
 0x183   : > { %v1135_v7 = vpop.permute.xlu1 %1134  ;;  %v1130_v8 = vpop.permute.xlu0 %1129 }
 0x184   : > { %v1352_v9 = vmul.f32 %v1135_v7, %v344_v5  ;;  %v1351_v10 = vmul.f32 %v1130_v8, %v343_v6 }
 0x186   : > { %1497 = vst.msk [vmem:[%s1800_s23 + $0x3e8] sm:$0xff] %vm1371_vm0, %v1352_v9  ;;  %1496 = vst.msk [vmem:[%s1800_s23 + $0x3e0] sm:$0xff] %vm1371_vm0, %v1351_v10 }
 0x187   : > { %v1145_v13 = vpop.permute.xlu1 %1144  ;;  %v1140_v14 = vpop.permute.xlu0 %1139 }
 0x188   : > { %v1354_v15 = vmul.f32 %v1145_v13, %v346_v11  ;;  %v1353_v16 = vmul.f32 %v1140_v14, %v345_v12 }
 0x18a   : > { %1499 = vst.msk [vmem:[%s1800_s23 + $0x3f8] sm:$0xff] %vm1371_vm0, %v1354_v15  ;;  %1498 = vst.msk [vmem:[%s1800_s23 + $0x3f0] sm:$0xff] %vm1371_vm0, %v1353_v16 }
 0x18b   : > { %v1155_v19 = vpop.permute.xlu1 %1154  ;;  %v1150_v20 = vpop.permute.xlu0 %1149 }
 0x18c   : > { %v1356_v21 = vmul.f32 %v1155_v19, %v348_v17  ;;  %v1355_v22 = vmul.f32 %v1150_v20, %v347_v18 }
 0x18e   : > { %1501 = vst.msk [vmem:[%s1800_s23 + $0x408] sm:$0xff] %vm1371_vm0, %v1356_v21  ;;  %1500 = vst.msk [vmem:[%s1800_s23 + $0x400] sm:$0xff] %vm1371_vm0, %v1355_v22 }
 0x18f   : > { %v1165_v25 = vpop.permute.xlu1 %1164  ;;  %v1160_v26 = vpop.permute.xlu0 %1159 }
 0x190   : > { %v1358_v27 = vmul.f32 %v1165_v25, %v350_v23  ;;  %v1357_v28 = vmul.f32 %v1160_v26, %v349_v24 }
 0x192   : > { %1503 = vst.msk [vmem:[%s1800_s23 + $0x418] sm:$0xff] %vm1371_vm0, %v1358_v27  ;;  %1502 = vst.msk [vmem:[%s1800_s23 + $0x410] sm:$0xff] %vm1371_vm0, %v1357_v28 }
 0x193   : > { %v1175_v31 = vpop.permute.xlu1 %1174  ;;  %v1170_v32 = vpop.permute.xlu0 %1169 }
 0x194   : > { %v1360_v33 = vmul.f32 %v1175_v31, %v352_v29  ;;  %v1359_v34 = vmul.f32 %v1170_v32, %v351_v30 }
 0x196   : > { %1505 = vst.msk [vmem:[%s1800_s23 + $0x428] sm:$0xff] %vm1371_vm0, %v1360_v33  ;;  %1504 = vst.msk [vmem:[%s1800_s23 + $0x420] sm:$0xff] %vm1371_vm0, %v1359_v34 }
 0x197   : > { %v1185_v37 = vpop.permute.xlu1 %1184  ;;  %v1180_v38 = vpop.permute.xlu0 %1179 }
 0x198   : > { %v1362_v39 = vmul.f32 %v1185_v37, %v354_v35  ;;  %v1361_v40 = vmul.f32 %v1180_v38, %v353_v36 }
 0x19a   : > { %1507 = vst.msk [vmem:[%s1800_s23 + $0x438] sm:$0xff] %vm1371_vm0, %v1362_v39  ;;  %1506 = vst.msk [vmem:[%s1800_s23 + $0x430] sm:$0xff] %vm1371_vm0, %v1361_v40 }
 0x19b   : > { %v1195_v43 = vpop.permute.xlu1 %1194  ;;  %v1190_v44 = vpop.permute.xlu0 %1189 }
 0x19c   : > { %v1364_v45 = vmul.f32 %v1195_v43, %v356_v41  ;;  %v1363_v46 = vmul.f32 %v1190_v44, %v355_v42 }
 0x19e   : > { %1509 = vst.msk [vmem:[%s1800_s23 + $0x448] sm:$0xff] %vm1371_vm0, %v1364_v45  ;;  %1508 = vst.msk [vmem:[%s1800_s23 + $0x440] sm:$0xff] %vm1371_vm0, %v1363_v46 }
 0x19f   : > { %v1205_v49 = vpop.permute.xlu1 %1204  ;;  %v1200_v50 = vpop.permute.xlu0 %1199 }
 0x1a0   : > { %v1366_v51 = vmul.f32 %v1205_v49, %v358_v47  ;;  %v1365_v52 = vmul.f32 %v1200_v50, %v357_v48 }
 0x1a2   : > { %1511 = vst.msk [vmem:[%s1800_s23 + $0x458] sm:$0xff] %vm1371_vm0, %v1366_v51  ;;  %1510 = vst.msk [vmem:[%s1800_s23 + $0x450] sm:$0xff] %vm1371_vm0, %v1365_v52 }
 0x1a3   : > { %v1215_v55 = vpop.permute.xlu1 %1214  ;;  %v1210_v56 = vpop.permute.xlu0 %1209 }
 0x1a4   : > { %v1368_v57 = vmul.f32 %v1215_v55, %v360_v53  ;;  %v1367_v58 = vmul.f32 %v1210_v56, %v359_v54 }
 0x1a6   : > { %1513 = vst.msk [vmem:[%s1800_s23 + $0x468] sm:$0xff] %vm1371_vm0, %v1368_v57  ;;  %1512 = vst.msk [vmem:[%s1800_s23 + $0x460] sm:$0xff] %vm1371_vm0, %v1367_v58 }
 0x1a7   : > { %v1225_v61 = vpop.permute.xlu1 %1224  ;;  %v1220_v62 = vpop.permute.xlu0 %1219 }
 0x1a8   : > { %v1370_v63 = vmul.f32 %v1225_v61, %v362_v59  ;;  %v1369_v0 = vmul.f32 %v1220_v62, %v361_v60 }
 0x1aa   : > { %1515 = vst.msk [vmem:[%s1800_s23 + $0x478] sm:$0xff] %vm1371_vm0, %v1370_v63  ;;  %1514 = vst.msk [vmem:[%s1800_s23 + $0x470] sm:$0xff] %vm1371_vm0, %v1369_v0 }
 0x1ab PF: > { %s12_s11 = sadd.s32 1, %s1680_s11   ;;  %s2324_s9 = smov %s1676_s10 }
 0x1ac   : > { %p9_p5 = scmp.ge.s32.totalorder %s12_s11, 4   ;;  %s2325_s10 = smov %s2327_s12 }
 0x1ae   :  { %11 = sbr.rel (!%p9_p5) target bundleno = 2 (0x2), region = 61 }

</bundles_post_ra>
